<compile_context>
chip_gen: v5e
topology: v5e:2x2
jax: 0.10.0
libtpu: 0.0.40
codegen_flags: <defaults>
</compile_context>

<pallas_src>
import functools

import jax
import jax.numpy as jnp
from jax.experimental import pallas as pl
from jax.experimental.pallas import tpu as pltpu


# ----------------------------------------------------------------------------
# Helpers
# ----------------------------------------------------------------------------
def _round_up(x: int, m: int) -> int:
    return (x + m - 1) // m * m


def _pick_tile(dim: int, target: int, minimum: int) -> int:
    """Largest tile <= target (halving) that divides `dim`.

    `dim` is guaranteed by padding to be a multiple of `minimum`.
    """
    t = max(target, minimum)
    while t > minimum and dim % t != 0:
        t //= 2
    return t


def _pad2(a, rows: int, cols: int):
    r, c = a.shape
    return jnp.pad(a, ((0, rows - r), (0, cols - c)))


# Modest explicit scoped-VMEM limit: safe on v5e/v6e (128 MiB phys) and v7x
# (64 MiB phys); demo tiles need ~1-2 MiB only.
_VMEM_LIMIT = 32 * 1024 * 1024


# ----------------------------------------------------------------------------
# Kernel 1: xw = (x @ W) in bf16  (small matmul, tiled over node rows)
# ----------------------------------------------------------------------------
def _xw_kernel(x_ref, w_ref, o_ref):
    xb = x_ref[...].astype(jnp.bfloat16)
    o_ref[...] = jnp.dot(
        xb, w_ref[...], preferred_element_type=jnp.float32
    ).astype(o_ref.dtype)


def xw_matmul(x_b, w_b):
    """x_b: (Np, Cin) bf16, w_b: (Cin, Cp) bf16  ->  (Np, Cp) bf16."""
    np_, ci = x_b.shape
    co = w_b.shape[1]
    tm = _pick_tile(np_, 256, 16)   # 16-row minimum: bf16 sublane packing
    return pl.pallas_call(
        _xw_kernel,
        out_shape=jax.ShapeDtypeStruct((np_, co), jnp.bfloat16),
        grid_spec=pltpu.PrefetchScalarGridSpec(
            num_scalar_prefetch=0,
            grid=(np_ // tm,),
            in_specs=[
                pl.BlockSpec((tm, ci), lambda i: (i, 0)),
                pl.BlockSpec((ci, co), lambda i: (0, 0)),
            ],
            out_specs=pl.BlockSpec((tm, co), lambda i: (i, 0)),
        ),
        compiler_params=pltpu.CompilerParams(
            dimension_semantics=("parallel",),
            vmem_limit_bytes=_VMEM_LIMIT,
        ),
    )(x_b, w_b)


# ----------------------------------------------------------------------------
# Kernel 2: out = [relu]( adj @ xw + b )   (tiled, f32 accumulator over K)
# ----------------------------------------------------------------------------
def _adj_matmul_kernel(adj_ref, xw_ref, b_ref, o_ref, acc_ref, *, apply_relu: bool):
    k = pl.program_id(1)

    @pl.when(k == 0)
    def _init():
        acc_ref[...] = jnp.zeros_like(acc_ref)

    # (TM, TK) bf16 x (TK, Cp) bf16 -> f32 accumulation on the MXU.
    acc_ref[...] += jnp.dot(
        adj_ref[...], xw_ref[...], preferred_element_type=jnp.float32
    )

    @pl.when(k == pl.num_programs(1) - 1)
    def _finalize():
        h = acc_ref[...] + b_ref[...]
        if apply_relu:
            h = jnp.maximum(h, 0.0)
        o_ref[...] = h.astype(o_ref.dtype)


def adj_matmul(adj_b, xw_b, b_p, *, apply_relu: bool, out_dtype):
    """adj_b: (Mp, Kp) bf16, xw_b: (Kp, Cp) bf16, b_p: (1, Cp) f32 -> (Mp, Cp)."""
    mp, kp = adj_b.shape
    co = xw_b.shape[1]
    tm = _pick_tile(mp, 256, 16)    # rows  -> "parallel" (megacore sharding)
    tk = _pick_tile(kp, 512, 128)   # K     -> "arbitrary" (reduction)
    kernel = functools.partial(_adj_matmul_kernel, apply_relu=apply_relu)
    return pl.pallas_call(
        kernel,
        out_shape=jax.ShapeDtypeStruct((mp, co), out_dtype),
        grid_spec=pltpu.PrefetchScalarGridSpec(
            num_scalar_prefetch=0,
            grid=(mp // tm, kp // tk),
            in_specs=[
                pl.BlockSpec((tm, tk), lambda i, k: (i, k)),   # adj tile
                pl.BlockSpec((tk, co), lambda i, k: (k, 0)),   # xw tile
                pl.BlockSpec((1, co), lambda i, k: (0, 0)),    # bias
            ],
            out_specs=pl.BlockSpec((tm, co), lambda i, k: (i, 0)),
            scratch_shapes=[pltpu.VMEM((tm, co), jnp.float32)],
        ),
        compiler_params=pltpu.CompilerParams(
            dimension_semantics=("parallel", "arbitrary"),
            vmem_limit_bytes=_VMEM_LIMIT,
        ),
    )(adj_b, xw_b, b_p)


# ----------------------------------------------------------------------------
# BaseGNN forward (glue around the Pallas layer kernels)
# ----------------------------------------------------------------------------
def base_gnn_forward(x_indices, X, init_adj, weights, biases, *, symmetric=True):
    n = X.shape[0]

    # __init__ adjacency preprocessing (module caches this; here built once
    # per forward, outside the layer loop).
    if symmetric:
        adj = init_adj + init_adj.T
        adj = jnp.where(adj > 1, 1.0, adj)
    else:
        adj = init_adj

    # 0/1 adjacency is exactly representable in bf16 -> lossless, halves the
    # dominant HBM traffic. Pad node count so tiles divide evenly (padded
    # rows/cols are zero and cannot contaminate real nodes: padded adjacency
    # COLUMNS are zero, so padded xw rows never contribute).
    np_ = _round_up(n, 128)
    adj_b = jnp.pad(adj, ((0, np_ - n), (0, np_ - n))).astype(jnp.bfloat16)
    x = jnp.pad(X, ((0, np_ - n), (0, 0))).astype(jnp.bfloat16)

    num_layers = len(weights)
    out = None
    for i, (w, b) in enumerate(zip(weights, biases)):
        b = jnp.asarray(b).reshape(1, -1)
        ci, co = w.shape
        ci_p = x.shape[1]                 # current (padded) input width
        co_p = _round_up(co, 128)         # lane-dense output channels
        w_p = _pad2(w, ci_p, co_p).astype(jnp.bfloat16)
        b_p = _pad2(b, 1, co_p).astype(jnp.float32)

        xw = xw_matmul(x, w_p)            # (Np, co_p) bf16, computed once

        if i < num_layers - 1:
            # norm = Identity, dropout = eval-mode identity, relu fused.
            # Intermediate activations stored bf16 (matches the bf16 cast the
            # next layer would do anyway; halves activation HBM traffic).
            x = adj_matmul(adj_b, xw, b_p, apply_relu=True,
                           out_dtype=jnp.bfloat16)
        else:
            # Only |x_indices| rows of the last layer are consumed: gather the
            # needed adjacency rows and compute just those outputs.
            s = x_indices.shape[0]
            sp = _round_up(s, 16)
            idx_p = jnp.pad(x_indices, (0, sp - s))
            adj_sel = jnp.take(adj_b, idx_p, axis=0)          # (Sp, Np)
            res = adj_matmul(adj_sel, xw, b_p, apply_relu=False,
                             out_dtype=jnp.float32)
            out = res[:s, :co]
    return out


# ----------------------------------------------------------------------------
# References for correctness checks
# ----------------------------------------------------------------------------
def _symmetrize(init_adj, symmetric):
    if symmetric:
        adj = init_adj + init_adj.T
        return jnp.where(adj > 1, 1.0, adj)
    return init_adj


def base_gnn_reference_f32(x_indices, X, init_adj, weights, biases, *, symmetric=True):
    """Pure-f32 module semantics."""
    adj = _symmetrize(init_adj, symmetric)
    hp = jax.lax.Precision.HIGHEST
    x = X
    for i in range(len(weights) - 1):
        b = jnp.asarray(biases[i]).reshape(1, -1)
        x = jnp.maximum(
            jnp.dot(adj, jnp.dot(x, weights[i], precision=hp), precision=hp) + b,
            0.0)
    b = jnp.asarray(biases[-1]).reshape(1, -1)
    x = jnp.dot(adj, jnp.dot(x, weights[-1], precision=hp), precision=hp) + b
    return x[x_indices]


def base_gnn_reference_mixed(x_indices, X, init_adj, weights, biases, *, symmetric=True):
    """Same bf16-input / f32-accumulate quantization as the kernels."""
    adj_b = _symmetrize(init_adj, symmetric).astype(jnp.bfloat16)
    x = X.astype(jnp.bfloat16)
    n_layers = len(weights)
    h = None
    for i in range(n_layers):
        b = jnp.asarray(biases[i]).reshape(1, -1).astype(jnp.float32)
        xw = jnp.dot(x, weights[i].astype(jnp.bfloat16),
                     preferred_element_type=jnp.float32).astype(jnp.bfloat16)
        h = jnp.dot(adj_b, xw, preferred_element_type=jnp.float32) + b
        if i < n_layers - 1:
            x = jnp.maximum(h, 0.0).astype(jnp.bfloat16)
    return h[x_indices]


# ----------------------------------------------------------------------------
# Demo / self-test
# ----------------------------------------------------------------------------
if __name__ == "__main__":
    N = 384            # number of nodes
    in_channels = 32
    hidden_channels = 64
    out_channels = 16
    num_layers = 3     # convs: (in->hidden), (hidden->hidden), (hidden->out)

    key = jax.random.PRNGKey(0)
    k_x, k_adj, k_w = jax.random.split(key, 3)

    X = jax.random.normal(k_x, (N, in_channels), dtype=jnp.float32)
    # 0/1 adjacency (satisfies the module's assert), symmetrized in-forward.
    init_adj = (jax.random.uniform(k_adj, (N, N)) < 0.05).astype(jnp.float32)

    layer_dims = [(in_channels, hidden_channels),
                  (hidden_channels, hidden_channels),
                  (hidden_channels, out_channels)]
    weights, biases = [], []
    for li, (ci, co) in enumerate(layer_dims):
        k_w, kk = jax.random.split(k_w)
        weights.append(jax.random.normal(kk, (ci, co), dtype=jnp.float32)
                       * (1.0 / jnp.sqrt(ci)))
        biases.append(jnp.zeros((1, co), dtype=jnp.float32) + 0.01 * li)

    x_indices = jnp.array([0, 7, 33, 120, 311], dtype=jnp.int32)

    out = base_gnn_forward(x_indices, X, init_adj, weights, biases, symmetric=True)
    out = jax.block_until_ready(out)
    assert out.shape == (x_indices.shape[0], out_channels), out.shape

    # Exact-quantization check (same bf16 inputs / f32 accumulation as kernels).
    ref_mixed = base_gnn_reference_mixed(x_indices, X, init_adj, weights, biases,
                                         symmetric=True)
    assert jnp.allclose(out, ref_mixed, rtol=2e-2, atol=2e-1), \
        float(jnp.max(jnp.abs(out - ref_mixed)))

    # Pure-f32 module semantics: bf16 rounding -> small norm-level error only.
    ref_f32 = base_gnn_reference_f32(x_indices, X, init_adj, weights, biases,
                                     symmetric=True)
    rel = jnp.linalg.norm(out - ref_f32) / jnp.linalg.norm(ref_f32)
    assert rel < 5e-2, float(rel)

    # TODO(synk): dropout uses eval-mode (identity) semantics; training-mode
    # stochastic dropout would use pltpu.prng_* inside the layer kernel.
    print("KERNEL_OK")
</pallas_src>

<mosaic_0001>
module attributes {stable_mosaic.version = 11 : i64} {
  func.func @_xw_kernel(%arg0: i32, %arg1: memref<128x32xbf16, #tpu.memory_space<vmem>>, %arg2: memref<32x128xbf16, #tpu.memory_space<vmem>>, %arg3: memref<128x128xbf16, #tpu.memory_space<vmem>>) attributes {dimension_semantics = [#tpu.dimension_semantics<parallel>], iteration_bounds = array<i64: 3>, scalar_prefetch = 0 : i64, scratch_operands = 0 : i64, tpu.core_type = #tpu.core_type<tc>, window_params = [{transform_indices = @transform_0, window_bounds = array<i64: 128, 32>}, {pipeline_mode = #tpu.pipeline_mode<synchronous>, transform_indices = @transform_1, window_bounds = array<i64: 32, 128>}, {transform_indices = @transform_2, window_bounds = array<i64: 128, 128>}]} {
    %c0 = arith.constant 0 : index
    %c0_0 = arith.constant 0 : index
    %0 = vector.load %arg1[%c0, %c0_0] : memref<128x32xbf16, #tpu.memory_space<vmem>>, vector<128x32xbf16>
    %c0_1 = arith.constant 0 : index
    %c0_2 = arith.constant 0 : index
    %1 = vector.load %arg2[%c0_1, %c0_2] : memref<32x128xbf16, #tpu.memory_space<vmem>>, vector<32x128xbf16>
    %cst = arith.constant dense<0.000000e+00> : vector<128x128xf32>
    %2 = tpu.matmul %0, %1, %cst {dimension_numbers = #tpu.dot_dimension_numbers<[1], [0], [0], [1], [0, 0, 1, 1], [], []>} : vector<128x32xbf16>, vector<32x128xbf16>, vector<128x128xf32> -> vector<128x128xf32>
    %3 = arith.truncf %2 : vector<128x128xf32> to vector<128x128xbf16>
    %c0_3 = arith.constant 0 : index
    %c0_4 = arith.constant 0 : index
    %4 = vector.load %arg3[%c0_3, %c0_4] : memref<128x128xbf16, #tpu.memory_space<vmem>>, vector<128x128xbf16>
    tpu.vector_store %arg3[%c0_3, %c0_4], %3 {strides = array<i32>} : memref<128x128xbf16, #tpu.memory_space<vmem>>, vector<128x128xbf16>,
    return
  }
  func.func @transform_0(%arg0: i32) -> (i32, i32) {
    %c0_i32 = arith.constant 0 : i32
    %c0_i32_0 = arith.constant 0 : i32
    return %arg0, %c0_i32 : i32, i32
  }
  func.func @transform_1(%arg0: i32) -> (i32, i32) {
    %c0_i32 = arith.constant 0 : i32
    %c0_i32_0 = arith.constant 0 : i32
    %c0_i32_1 = arith.constant 0 : i32
    return %c0_i32, %c0_i32_0 : i32, i32
  }
  func.func @transform_2(%arg0: i32) -> (i32, i32) {
    %c0_i32 = arith.constant 0 : i32
    %c0_i32_0 = arith.constant 0 : i32
    return %arg0, %c0_i32 : i32, i32
  }
}

</mosaic_0001>

<bundles_post_ra>
// kernel: tpu_custom_call.1
= control target key start
LH: loop header
LB: loop body
LE: loop exit
PB: predicated region body
PF: predicated region fallthrough
CT: control target
= control target key end

     0   :  { %7 = vsyncpa [#allocation3], 0  ;;  %s750_s0 = inlined_call_operand.vmem [shape: bf16[384,32], index: 0, kind: input, shape index: {}]   ;;  %s751_s1 = inlined_call_operand.vmem [shape: bf16[32,128], index: 1, kind: input, shape index: {}]   ;;  %s752_s2 = inlined_call_operand.hbm [shape: bf16[384,128], index: 2, kind: output, shape index: {}]  }
   0x1   :  { %9 = vsyncpa [#allocation3 + $0x1], 0  ;;  %s648_s9 = smov 0   ;;  %s650_s10 = smov 0  }
   0x2   :  { %s652_s11 = smov 0   ;;  %s654_s12 = smov 0  }
   0x3 LB: > { %s669_s13 = sadd.s32 4294967295, %s629_s12   ;;  %s402_s14 = sadd.s32 4294967294, %s629_s12   ;;  %s629_s12 = sphi %s654_s12, %s758_s12   ;;  %s625_s11 = sphi %s652_s11, %s757_s11   ;;  %s621_s10 = sphi %s650_s10, %s756_s10   ;;  %s617_s9 = sphi %s648_s9, %s755_s9  }
   0x4   : > { %s673_s15 = sadd.s32 1, %s629_s12   ;;  %s69_s16 = sadd.s32 1, %s625_s11 }
   0x5   : > { %s66_s17 = ssub.s32 %s629_s12, %s673_s15  ;;  %p79_p0 = scmp.ne.s32.totalorder %s625_s11, %s621_s10 }
   0x6   : > { %p67_p1 = scmp.eq.s32.totalorder %s66_s17, 0  ;;  %p80_p2 = scmp.eq.s32.totalorder %s669_s13, 2 }
   0x7   : > { %p85_p3 = scmp.ne.s32.totalorder %s621_s10, %s617_s9  ;;  %p86_p4 = scmp.eq.s32.totalorder %s402_s14, 2 }
   0x8   : > { %s684_s18 = scalar_select %p67_p1, %s625_s11, %s69_s16  }
   0x9   : > { %p686_p5 = por %p80_p2, %p79_p0  ;;  %p690_p6 = por %p86_p4, %p85_p3 }
   0xa   : > { %p405_p7 = scmp.ge.s32.totalorder %s629_s12, 1  ;;  %p116_p8 = scmp.lt.s32.totalorder %s629_s12, 4 }
   0xc   : > { %p117_p9 = pnand %p405_p7, %p116_p8 }
   0xd   : > { %s407_s23 = sshll.u32 (!%p117_p9), %s669_s13, 4  ;;  %s135_s30 = sand.u32 (!%p117_p9), 1, %s621_s10  }
   0xe   : > { %120 = sbr.rel (%p117_p9) target bundleno = 191 (0xbf), region = 28  ;;  %p139_p10 = scmp.lt.s32.totalorder (!%p117_p9), %s407_s23, 47 }
   0xf   : > { %s406_s3 = sshll.u32 (!%p117_p9), %s135_s30, 6  ;;  %s472_s5 = sshll.u32 (!%p117_p9), %s669_s13, 6 }
  0x10   : > { %s137_s4 = scalar_lea.vmem (!%p117_p9), [#allocation2], %s406_s3  ;;  %s336_s8 = scalar_lea.hbm (!%p117_p9), %s752_s2, %s472_s5 }
  0x11   : > { %s337_s14 = sshll.u32 (!%p117_p9), %s137_s4, 4  ;;  %s339_s16 = sshll.u32 (!%p117_p9), %s336_s8, 4  ;;  %s338_s14 = int_to_ptr.vmem [resolvable:$true] %s337_s14  ;;  %s340_s16 = int_to_ptr.hbm [resolvable:$true] %s339_s16 }
  0x12   : > { %s325_s13 = scalar_lea.sflag (!%p117_p9), [#allocation3], %s135_s30  ;;  %s581_s17 = sshra.s32 (!%p117_p9), %s340_s16, 4  ;;  %s582_s17 = int_to_ptr.hbm [resolvable:$true] %s581_s17 }
  0x13   : > { %v471_v0 = vld [vmem:[%s751_s1 + $0x8] sm:$0xff]  ;;  %v470_v1 = vld [vmem:[%s751_s1] sm:$0xff]  ;;  %s760_s23 = smov (!%p139_p10, %s407_s23), 47  ;;  %vm218_vm0 = vcmask 261120   ;;  %s583_s21 = scalar_lea.hbm %s582_s17, 64 }
  0x14   : > { %249 = vmatpush.bf16.msra.mxu0 %v471_v0  ;;  %520 = vmatpush.bf16.msra.mxu1 %v471_v0  ;;  %s408_s26 = sshll.u32 %s760_s23, 2  ;;  %p584_p11 = scmp.ne.s32.totalorder %s582_s17, %s583_s21 }
  0x15   : > { %521 = vmatpush.bf16.msra.mxu2 %v471_v0  ;;  %522 = vmatpush.bf16.msra.mxu3 %v471_v0  ;;  %s142_s29 = scalar_lea.vmem %s750_s0, %s408_s26  ;;  %s587_s24 = scalar_lea.hbm %s752_s2, 192 }
  0x16   : > { %v462_v2 = vld [vmem:[%s142_s29] sm:$0xff]  ;;  %v464_v3 = vld [vmem:[%s142_s29 + $0x10] sm:$0xff]  ;;  %v463_v6 = vld [vmem:[%s142_s29 + $0x8] sm:$0xff]  ;;  %p585_p12 = pnand %p584_p11, %p686_p5  ;;  %p588_p0 = scmp.lt.s32.totalorder %s582_s17, %s752_s2 }
  0x17   : > { %v466_v4 = vld [vmem:[%s142_s29 + $0x20] sm:$0xff]  ;;  %v468_v5 = vld [vmem:[%s142_s29 + $0x30] sm:$0xff]  ;;  %v465_v7 = vld [vmem:[%s142_s29 + $0x18] sm:$0xff]  ;;  %p589_p1 = scmp.lt.s32.totalorder %s587_s24, %s583_s21 }
  0x18   : > { %250 = vmatpush.bf16.msra.mxu0 %v470_v1  ;;  %523 = vmatpush.bf16.msra.mxu1 %v470_v1  ;;  %v467_v8 = vld [vmem:[%s142_s29 + $0x28] sm:$0xff]  ;;  %v469_v9 = vld [vmem:[%s142_s29 + $0x38] sm:$0xff]  ;;  %p586_p13 = pneg %p585_p12 }
  0x19   : > { %524 = vmatpush.bf16.msra.mxu2 %v470_v1  ;;  %525 = vmatpush.bf16.msra.mxu3 %v470_v1  ;;  %p590_p2 = por %p589_p1, %p588_p0 }
  0x1b   : > { %449 = vmatmul.msk.bf16.vlgmr.msra.gmra.mxu0 %vm218_vm0, %v462_v2  ;;  %451 = vmatmul.msk.bf16.vlgmr.msra.gmra.mxu1 %vm218_vm0, %v464_v3  ;;  %p591_p3 = pnand %p590_p2, %p586_p13 }
  0x1c   : > { %453 = vmatmul.msk.bf16.vlgmr.msra.gmra.mxu2 %vm218_vm0, %v466_v4  ;;  %455 = vmatmul.msk.bf16.vlgmr.msra.gmra.mxu3 %vm218_vm0, %v468_v5 }
  0x2b   : > { %450 = vmatmul.msk.bf16.gmra.mxu0 %vm218_vm0, %v463_v6  ;;  %452 = vmatmul.msk.bf16.gmra.mxu1 %vm218_vm0, %v465_v7 }
  0x2c   : > { %454 = vmatmul.msk.bf16.gmra.mxu2 %vm218_vm0, %v467_v8  ;;  %456 = vmatmul.msk.bf16.gmra.mxu3 %vm218_vm0, %v469_v9 }
  0x98   : > { %v252_v10 = vpop.f32.mrf.mxu0  ;;  %v262_v11 = vpop.f32.mrf.mxu1 }
  0x9f   : > { %v272_v12 = vpop.f32.mrf.mxu2  ;;  %v282_v13 = vpop.f32.mrf.mxu3 }
  0xa0   : > { %v254_v14 = vpop.f32.mrf.mxu0  ;;  %v264_v15 = vpop.f32.mrf.mxu1 }
  0xa1   : > { %v476_v16 = vpack.c.bf16 %v254_v14, %v252_v10  ;;  %v486_v17 = vpack.c.bf16 %v264_v15, %v262_v11 }
  0xa3   : > { %477 = vst [vmem:[%s137_s4] sm:$0xff] %v476_v16  }
  0xa4   : > { %514 = vst [vmem:[%s137_s4 + $0x10] sm:$0xff] %v486_v17  }
  0xa7   : > { %v274_v18 = vpop.f32.mrf.mxu2  ;;  %v284_v19 = vpop.f32.mrf.mxu3 }
  0xa8   : > { %v496_v20 = vpack.c.bf16 %v274_v18, %v272_v12  ;;  %v506_v21 = vpack.c.bf16 %v284_v19, %v282_v13  ;;  %v257_v22 = vpop.f32.mrf.mxu0  ;;  %v267_v23 = vpop.f32.mrf.mxu1 }
  0xaa   : > { %516 = vst [vmem:[%s137_s4 + $0x20] sm:$0xff] %v496_v20  }
  0xab   : > { %518 = vst [vmem:[%s137_s4 + $0x30] sm:$0xff] %v506_v21  }
  0xaf   : > { %v277_v24 = vpop.f32.mrf.mxu2  ;;  %v287_v25 = vpop.f32.mrf.mxu3 }
  0xb0   : > { %v259_v26 = vpop.f32.mrf.mxu0  ;;  %v269_v27 = vpop.f32.mrf.mxu1 }
  0xb1   : > { %v481_v28 = vpack.c.bf16 %v259_v26, %v257_v22  ;;  %v491_v29 = vpack.c.bf16 %v269_v27, %v267_v23 }
  0xb3   : > { %513 = vst [vmem:[%s137_s4 + $0x8] sm:$0xff] %v481_v28  }
  0xb4   : > { %515 = vst [vmem:[%s137_s4 + $0x18] sm:$0xff] %v491_v29  }
  0xb7   : > { %v279_v30 = vpop.f32.mrf.mxu2  ;;  %v289_v31 = vpop.f32.mrf.mxu3 }
  0xb8   : > { %v501_v32 = vpack.c.bf16 %v279_v30, %v277_v24  ;;  %v511_v33 = vpack.c.bf16 %v289_v31, %v287_v25 }
  0xba   : > { %517 = vst [vmem:[%s137_s4 + $0x28] sm:$0xff] %v501_v32  }
  0xbb   : > { %519 = vst [vmem:[%s137_s4 + $0x38] sm:$0xff] %v511_v33  }
  0xbc   : > { %594 = shalt.err (!%p591_p3)
}
  0xbd   : > { %s631_s27 = smov 64   ;;  %s632_s28 = smov 4  }
  0xbe   : > { %526 = dma.vmem_to_hbm [thread:$0]  (%p686_p5), %s338_s14, 1024, %s340_s16, %s325_s13, %s631_s27, %s631_s27, %s632_s28  }
  0xbf PF: > { %p532_p4 = scmp.ge.s32.totalorder %s629_s12, 2  ;;  %s354_s29 = sand.u32 1, %s617_s9  }
  0xc0   : > { %s355_s30 = scalar_lea.sflag [#allocation3], %s354_s29 }
  0xc1   : > { %p529_p7 = pnand %p532_p4, %p690_p6 }
  0xc3   : > { %p530_p8 = pneg %p529_p7 }
  0xc5   : > { %612 = dma.done.wait (%p530_p8), %s355_s30, 1024  }
  0xc6   : > { %614 = vsyncadd (%p530_p8), %s355_s30, 4294966272  ;;  %p12_p9 = scmp.ge.s32.totalorder %s673_s15, 5   ;;  %s755_s9 = smov %s621_s10 }
  0xc7   : > { %s756_s10 = smov %s625_s11  ;;  %s757_s11 = smov %s684_s18 }
  0xc8   : > { %s758_s12 = smov %s673_s15  ;;  %14 = sbr.rel (!%p12_p9) target bundleno = 3 (0x3), region = 63 }
  0xcd   :  { %361 = vsyncpa [#allocation3], 1 }
  0xce   :  { %363 = vsyncpa [#allocation3 + $0x1], 1 }

</bundles_post_ra>
